<compile_context>
chip_gen: v5e
topology: v5e:2x2
jax: 0.10.0
libtpu: 0.0.40
codegen_flags: <defaults>
</compile_context>

<pallas_src>
import jax
import jax.numpy as jnp
from jax.experimental import pallas as pl
from jax.experimental.pallas import tpu as pltpu

EMBED = 32          # embed_size
HEADS = 4           # heads
HEAD_DIM = EMBED // HEADS
FWD_EXP = 4         # forward_expansion
EPS = 1e-5          # nn.LayerNorm default


# ------------------------------------------------------------------ kernel --

def _make_decoder_kernel(N, LQ, LV, E, HFF):
    """Whole batch in one invocation: x (N*LQ,E), value (N*LV,E) -> out (N*LQ,E)."""

    def kernel(x_ref, v_ref, w32_ref, w128_ref, o_ref):
        x = x_ref[...]                          # (N*LQ, E) f32
        v = v_ref[...]                          # (N*LV, E) f32

        # ---- unpack packed parameter slabs (static slices) -----------------
        wa_s = w32_ref[0:E, :]                  # folded self-attn weight  (E, E)
        wa_c = w32_ref[E:2 * E, :]              # folded cross-attn weight (E, E)
        ff_w2 = w32_ref[2 * E:2 * E + HFF, :]   # (HFF, E)
        ff_w1 = w128_ref[0:E, :]                # (E, HFF)

        base = E                                # bias / gamma / beta rows follow ff_w1

        def vec(i, width=E):
            return w128_ref[base + i:base + i + 1, 0:width]   # (1, width)

        fcb_s, g0, b0 = vec(0), vec(1), vec(2)
        fcb_c, g1, b1 = vec(3), vec(4), vec(5)
        ff_b2, g2, b2 = vec(6), vec(7), vec(8)
        ff_b1 = vec(9, HFF)

        def layer_norm(y, g, b):
            # single-pass: mean and mean-of-squares reduce in parallel
            mean = jnp.mean(y, axis=-1, keepdims=True)
            msq = jnp.mean(y * y, axis=-1, keepdims=True)
            var = jnp.maximum(msq - mean * mean, 0.0)
            return (y - mean) * jax.lax.rsqrt(var + jnp.float32(EPS)) * g + b

        def broadcast_rows(rows, seq):          # (N, E) -> (N*seq, E)
            return jnp.broadcast_to(rows[:, None, :], (N, seq, E)).reshape(N * seq, E)

        # ---- self-attention: softmax row-sums are 1, so the output is the key-axis
        #      sum of the per-head projected values, broadcast over queries.
        xs = jnp.sum(x.reshape(N, LQ, E), axis=1)                          # (N, E) XLU reduce
        attn = jnp.dot(xs, wa_s, preferred_element_type=jnp.float32) + fcb_s
        query = layer_norm(broadcast_rows(attn, LQ) + x, g0, b0)           # dropout = identity

        # ---- cross-attention: same identity; depends only on `value` (key/masks dead).
        vs = jnp.sum(v.reshape(N, LV, E), axis=1)                          # (N, E)
        attn2 = jnp.dot(vs, wa_c, preferred_element_type=jnp.float32) + fcb_c
        xt = layer_norm(broadcast_rows(attn2, LQ) + query, g1, b1)         # dropout = identity

        # ---- feed-forward
        h = jnp.dot(xt, ff_w1, preferred_element_type=jnp.float32) + ff_b1
        h = jnp.maximum(h, 0.0)
        ff = jnp.dot(h, ff_w2, preferred_element_type=jnp.float32) + ff_b2

        o_ref[...] = layer_norm(ff + xt, g2, b2)                           # dropout = identity

    return kernel


# ----------------------------------------------------------------- wrapper --

def decoder_block_forward(x, value, key, src_mask, trg_mask, packed):
    # key / src_mask / trg_mask provably do not affect the output (see header);
    # kept in the signature for parity with the PyTorch module.
    del key, src_mask, trg_mask

    N, LQ, E = x.shape
    LV = value.shape[1]
    HFF = packed["w128"].shape[1]               # = FWD_EXP * E

    kernel = _make_decoder_kernel(N, LQ, LV, E, HFF)

    out = pl.pallas_call(
        kernel,
        out_shape=jax.ShapeDtypeStruct((N * LQ, E), jnp.float32),
        # Gridless call: full arrays land in VMEM, one invocation for the whole batch.
        # TODO(synk): when N*Lq scales up, reintroduce a row-tiled grid and set
        #             pltpu.CompilerParams(vmem_limit_bytes=...) against v7x's 64 MiB.
    )(x.reshape(N * LQ, E), value.reshape(N * LV, E),
      packed["w32"], packed["w128"])

    return out.reshape(N, LQ, E)


# ------------------------------------------ one-time weight fold + packing --

def pack_params(params):
    """Fold per-head value projections into fc_out and pack all params into 2 slabs.

    Done ONCE next to the params (not in the per-call path).
    """
    pa, pc = params["self_attn"], params["cross_attn"]
    eye_h = jnp.eye(HEADS, dtype=jnp.float32)
    # Head-shared (hd,hd) value projection is block-diagonal over heads -> fold into
    # fc_out: one (E,E) matrix per attention.
    wa_s = jnp.kron(eye_h, pa["wv"]) @ pa["fc_w"]
    wa_c = jnp.kron(eye_h, pc["wv"]) @ pc["fc_w"]

    # Slab 1: everything with E columns, stacked along rows -> (2E + HFF, E).
    w32 = jnp.concatenate([wa_s, wa_c, params["ff_w2"]], axis=0)

    # Slab 2: ff_w1 plus every (1,·) bias/gamma/beta row, padded to HFF lanes
    # -> (E + 10, HFF).
    W = FWD_EXP * EMBED
    assert W >= EMBED

    def row(v):
        return jnp.pad(v, ((0, 0), (0, W - v.shape[1])))

    vec_rows = jnp.concatenate([
        row(pa["fc_b"]), row(params["norm_g"]), row(params["norm_b"]),
        row(pc["fc_b"]), row(params["norm1_g"]), row(params["norm1_b"]),
        row(params["ff_b2"]), row(params["norm2_g"]), row(params["norm2_b"]),
        row(params["ff_b1"]),
    ], axis=0)
    w128 = jnp.concatenate([params["ff_w1"], vec_rows], axis=0)

    return dict(w32=w32, w128=w128)


# --------------------------------------------------- pure-JAX reference impl --

def _reference_forward(x, value, key, src_mask, trg_mask, params):
    """Literal re-implementation of the PyTorch module (incl. the dead softmax path)."""
    def self_attention(values, keys, query, mask, p):
        N, Lq, E = query.shape
        H, hd = HEADS, HEAD_DIM
        split = lambda t: t.reshape(t.shape[0], t.shape[1], H, hd)
        v = split(values) @ p["wv"]
        q = split(query) @ p["wq"]
        k = split(keys) @ p["wk"]
        energy = jnp.einsum("nqhd,nkhd->nhqk", q, k)
        energy = jnp.where(mask == 0, jnp.float32(-1e20), energy)
        attn = jax.nn.softmax(energy / (E ** 0.5), axis=3)
        out = jnp.einsum("nhqk,nvhd->nqhd", attn, v).reshape(N, Lq, E)
        return out @ p["fc_w"] + p["fc_b"]

    def ln(y, g, b):
        m = jnp.mean(y, axis=-1, keepdims=True)
        var = jnp.mean((y - m) ** 2, axis=-1, keepdims=True)
        return (y - m) / jnp.sqrt(var + EPS) * g + b

    attn = self_attention(x, x, x, trg_mask, params["self_attn"])
    query = ln(attn + x, params["norm_g"], params["norm_b"])
    attn2 = self_attention(value, key, query, src_mask, params["cross_attn"])
    xt = ln(attn2 + query, params["norm1_g"], params["norm1_b"])
    h = jnp.maximum(xt @ params["ff_w1"] + params["ff_b1"], 0.0)
    ff = h @ params["ff_w2"] + params["ff_b2"]
    return ln(ff + xt, params["norm2_g"], params["norm2_b"])


# --------------------------------------------------------------------- init --

def init_params(rng):
    hd = HEAD_DIM
    ks = jax.random.split(rng, 8)

    def mat(k, shape, scale=0.05):
        return (jax.random.normal(k, shape, jnp.float32) * scale).astype(jnp.float32)

    def attn_p(k):
        a, b, c, d, e = jax.random.split(k, 5)
        return dict(
            # wq / wk are part of the module but provably do not affect the output.
            wq=mat(a, (hd, hd)), wk=mat(b, (hd, hd)), wv=mat(c, (hd, hd)),
            fc_w=mat(d, (EMBED, EMBED)),
            fc_b=mat(e, (1, EMBED), scale=0.01),
        )

    return dict(
        self_attn=attn_p(ks[0]),
        cross_attn=attn_p(ks[1]),
        norm_g=jnp.ones((1, EMBED), jnp.float32),  norm_b=jnp.zeros((1, EMBED), jnp.float32),
        norm1_g=jnp.ones((1, EMBED), jnp.float32), norm1_b=jnp.zeros((1, EMBED), jnp.float32),
        norm2_g=jnp.ones((1, EMBED), jnp.float32), norm2_b=jnp.zeros((1, EMBED), jnp.float32),
        ff_w1=mat(ks[2], (EMBED, FWD_EXP * EMBED)),
        ff_b1=mat(ks[3], (1, FWD_EXP * EMBED), scale=0.01),
        ff_w2=mat(ks[4], (FWD_EXP * EMBED, EMBED)),
        ff_b2=mat(ks[5], (1, EMBED), scale=0.01),
    )


# --------------------------------------------------------------------- main --

if __name__ == "__main__":
    N, L = 2, 8
    root = jax.random.PRNGKey(0)
    k_x, k_v, k_k, k_p = jax.random.split(root, 4)

    x = jax.random.normal(k_x, (N, L, EMBED), jnp.float32)
    value = jax.random.normal(k_v, (N, L, EMBED), jnp.float32)
    key = jax.random.normal(k_k, (N, L, EMBED), jnp.float32)

    # trg mask: causal (N, 1, L, L); src mask: all-ones (N, 1, 1, L)
    trg_mask = jnp.broadcast_to(jnp.tril(jnp.ones((L, L), jnp.float32))[None, None],
                                (N, 1, L, L))
    src_mask = jnp.ones((N, 1, 1, L), jnp.float32)

    params = init_params(k_p)
    packed = pack_params(params)          # weight fold + packing: once, not per call

    fwd = jax.jit(decoder_block_forward)
    out = jax.block_until_ready(fwd(x, value, key, src_mask, trg_mask, packed))

    assert out.shape == (N, L, EMBED)
    assert bool(jnp.all(jnp.isfinite(out)))

    # Correctness: fused/identity-exploiting kernel vs literal reference.
    with jax.default_matmul_precision("highest"):
        ref = _reference_forward(x, value, key, src_mask, trg_mask, params)
    max_err = float(jnp.max(jnp.abs(out - ref)))
    assert max_err < 1e-3, f"mismatch vs reference: max_err={max_err}"

    print("KERNEL_OK")
</pallas_src>

<mosaic_0001>
module attributes {stable_mosaic.version = 11 : i64} {
  func.func @kernel(%arg0: memref<16x32xf32, #tpu.memory_space<vmem>>, %arg1: memref<16x32xf32, #tpu.memory_space<vmem>>, %arg2: memref<192x32xf32, #tpu.memory_space<vmem>>, %arg3: memref<42x128xf32, #tpu.memory_space<vmem>>, %arg4: memref<16x32xf32, #tpu.memory_space<vmem>>) attributes {dimension_semantics = [], scalar_prefetch = 0 : i64, scratch_operands = 0 : i64, tpu.core_type = #tpu.core_type<tc>} {
    %c0 = arith.constant 0 : index
    %c0_0 = arith.constant 0 : index
    %0 = vector.load %arg0[%c0, %c0_0] : memref<16x32xf32, #tpu.memory_space<vmem>>, vector<16x32xf32>
    %c0_1 = arith.constant 0 : index
    %c0_2 = arith.constant 0 : index
    %1 = vector.load %arg1[%c0_1, %c0_2] : memref<16x32xf32, #tpu.memory_space<vmem>>, vector<16x32xf32>
    %c0_3 = arith.constant 0 : index
    %c0_4 = arith.constant 0 : index
    %2 = vector.load %arg2[%c0_3, %c0_4] : memref<192x32xf32, #tpu.memory_space<vmem>>, vector<32x32xf32>
    %c32 = arith.constant 32 : index
    %c0_5 = arith.constant 0 : index
    %3 = vector.load %arg2[%c32, %c0_5] : memref<192x32xf32, #tpu.memory_space<vmem>>, vector<32x32xf32>
    %c64 = arith.constant 64 : index
    %c0_6 = arith.constant 0 : index
    %4 = vector.load %arg2[%c64, %c0_6] : memref<192x32xf32, #tpu.memory_space<vmem>>, vector<128x32xf32>
    %c0_7 = arith.constant 0 : index
    %c0_8 = arith.constant 0 : index
    %5 = vector.load %arg3[%c0_7, %c0_8] : memref<42x128xf32, #tpu.memory_space<vmem>>, vector<32x128xf32>
    %c32_9 = arith.constant 32 : index
    %c0_10 = arith.constant 0 : index
    %6 = vector.load %arg3[%c32_9, %c0_10] : memref<42x128xf32, #tpu.memory_space<vmem>>, vector<1x32xf32>
    %c33 = arith.constant 33 : index
    %c0_11 = arith.constant 0 : index
    %7 = vector.load %arg3[%c33, %c0_11] : memref<42x128xf32, #tpu.memory_space<vmem>>, vector<1x32xf32>
    %c34 = arith.constant 34 : index
    %c0_12 = arith.constant 0 : index
    %8 = vector.load %arg3[%c34, %c0_12] : memref<42x128xf32, #tpu.memory_space<vmem>>, vector<1x32xf32>
    %c35 = arith.constant 35 : index
    %c0_13 = arith.constant 0 : index
    %9 = vector.load %arg3[%c35, %c0_13] : memref<42x128xf32, #tpu.memory_space<vmem>>, vector<1x32xf32>
    %c36 = arith.constant 36 : index
    %c0_14 = arith.constant 0 : index
    %10 = vector.load %arg3[%c36, %c0_14] : memref<42x128xf32, #tpu.memory_space<vmem>>, vector<1x32xf32>
    %c37 = arith.constant 37 : index
    %c0_15 = arith.constant 0 : index
    %11 = vector.load %arg3[%c37, %c0_15] : memref<42x128xf32, #tpu.memory_space<vmem>>, vector<1x32xf32>
    %c38 = arith.constant 38 : index
    %c0_16 = arith.constant 0 : index
    %12 = vector.load %arg3[%c38, %c0_16] : memref<42x128xf32, #tpu.memory_space<vmem>>, vector<1x32xf32>
    %c39 = arith.constant 39 : index
    %c0_17 = arith.constant 0 : index
    %13 = vector.load %arg3[%c39, %c0_17] : memref<42x128xf32, #tpu.memory_space<vmem>>, vector<1x32xf32>
    %c40 = arith.constant 40 : index
    %c0_18 = arith.constant 0 : index
    %14 = vector.load %arg3[%c40, %c0_18] : memref<42x128xf32, #tpu.memory_space<vmem>>, vector<1x32xf32>
    %c41 = arith.constant 41 : index
    %c0_19 = arith.constant 0 : index
    %15 = vector.load %arg3[%c41, %c0_19] : memref<42x128xf32, #tpu.memory_space<vmem>>, vector<1x128xf32>
    %16 = vector.shape_cast %0 : vector<16x32xf32> to vector<2x8x32xf32>
    %cst = arith.constant dense<0.000000e+00> : vector<2x32xf32>
    %17 = vector.multi_reduction <add>, %16, %cst [1] : vector<2x8x32xf32> to vector<2x32xf32>
    %cst_20 = arith.constant dense<0.000000e+00> : vector<2x32xf32>
    %18 = tpu.matmul %17, %2, %cst_20 {dimension_numbers = #tpu.dot_dimension_numbers<[1], [0], [0], [1], [0, 0, 1, 1], [], []>} : vector<2x32xf32>, vector<32x32xf32>, vector<2x32xf32> -> vector<2x32xf32>
    %19 = vector.broadcast %6 : vector<1x32xf32> to vector<2x32xf32>
    %20 = arith.addf %18, %19 : vector<2x32xf32>
    %21 = vector.shape_cast %20 : vector<2x32xf32> to vector<2x1x32xf32>
    %22 = vector.shape_cast %21 : vector<2x1x32xf32> to vector<2x1x32xf32>
    %23 = vector.broadcast %22 : vector<2x1x32xf32> to vector<2x8x32xf32>
    %24 = vector.shape_cast %23 : vector<2x8x32xf32> to vector<16x32xf32>
    %25 = arith.addf %24, %0 : vector<16x32xf32>
    %cst_21 = arith.constant dense<0.000000e+00> : vector<16xf32>
    %26 = vector.multi_reduction <add>, %25, %cst_21 [1] : vector<16x32xf32> to vector<16xf32>
    %27 = vector.shape_cast %26 : vector<16xf32> to vector<16x1xf32>
    %cst_22 = arith.constant 3.200000e+01 : f32
    %28 = vector.broadcast %cst_22 : f32 to vector<16x1xf32>
    %29 = arith.divf %27, %28 : vector<16x1xf32>
    %30 = arith.mulf %25, %25 : vector<16x32xf32>
    %cst_23 = arith.constant dense<0.000000e+00> : vector<16xf32>
    %31 = vector.multi_reduction <add>, %30, %cst_23 [1] : vector<16x32xf32> to vector<16xf32>
    %32 = vector.shape_cast %31 : vector<16xf32> to vector<16x1xf32>
    %cst_24 = arith.constant 3.200000e+01 : f32
    %33 = vector.broadcast %cst_24 : f32 to vector<16x1xf32>
    %34 = arith.divf %32, %33 : vector<16x1xf32>
    %35 = arith.mulf %29, %29 : vector<16x1xf32>
    %36 = arith.subf %34, %35 : vector<16x1xf32>
    %cst_25 = arith.constant 0.000000e+00 : f32
    %37 = vector.broadcast %cst_25 : f32 to vector<16x1xf32>
    %38 = arith.maximumf %36, %37 : vector<16x1xf32>
    %39 = vector.broadcast %29 : vector<16x1xf32> to vector<16x32xf32>
    %40 = arith.subf %25, %39 : vector<16x32xf32>
    %cst_26 = arith.constant 9.99999974E-6 : f32
    %41 = vector.broadcast %cst_26 : f32 to vector<16x1xf32>
    %42 = arith.addf %38, %41 : vector<16x1xf32>
    %43 = math.rsqrt %42 : vector<16x1xf32>
    %44 = vector.broadcast %43 : vector<16x1xf32> to vector<16x32xf32>
    %45 = arith.mulf %40, %44 : vector<16x32xf32>
    %46 = vector.broadcast %7 : vector<1x32xf32> to vector<16x32xf32>
    %47 = arith.mulf %45, %46 : vector<16x32xf32>
    %48 = vector.broadcast %8 : vector<1x32xf32> to vector<16x32xf32>
    %49 = arith.addf %47, %48 : vector<16x32xf32>
    %50 = vector.shape_cast %1 : vector<16x32xf32> to vector<2x8x32xf32>
    %cst_27 = arith.constant dense<0.000000e+00> : vector<2x32xf32>
    %51 = vector.multi_reduction <add>, %50, %cst_27 [1] : vector<2x8x32xf32> to vector<2x32xf32>
    %cst_28 = arith.constant dense<0.000000e+00> : vector<2x32xf32>
    %52 = tpu.matmul %51, %3, %cst_28 {dimension_numbers = #tpu.dot_dimension_numbers<[1], [0], [0], [1], [0, 0, 1, 1], [], []>} : vector<2x32xf32>, vector<32x32xf32>, vector<2x32xf32> -> vector<2x32xf32>
    %53 = vector.broadcast %9 : vector<1x32xf32> to vector<2x32xf32>
    %54 = arith.addf %52, %53 : vector<2x32xf32>
    %55 = vector.shape_cast %54 : vector<2x32xf32> to vector<2x1x32xf32>
    %56 = vector.shape_cast %55 : vector<2x1x32xf32> to vector<2x1x32xf32>
    %57 = vector.broadcast %56 : vector<2x1x32xf32> to vector<2x8x32xf32>
    %58 = vector.shape_cast %57 : vector<2x8x32xf32> to vector<16x32xf32>
    %59 = arith.addf %58, %49 : vector<16x32xf32>
    %cst_29 = arith.constant dense<0.000000e+00> : vector<16xf32>
    %60 = vector.multi_reduction <add>, %59, %cst_29 [1] : vector<16x32xf32> to vector<16xf32>
    %61 = vector.shape_cast %60 : vector<16xf32> to vector<16x1xf32>
    %cst_30 = arith.constant 3.200000e+01 : f32
    %62 = vector.broadcast %cst_30 : f32 to vector<16x1xf32>
    %63 = arith.divf %61, %62 : vector<16x1xf32>
    %64 = arith.mulf %59, %59 : vector<16x32xf32>
    %cst_31 = arith.constant dense<0.000000e+00> : vector<16xf32>
    %65 = vector.multi_reduction <add>, %64, %cst_31 [1] : vector<16x32xf32> to vector<16xf32>
    %66 = vector.shape_cast %65 : vector<16xf32> to vector<16x1xf32>
    %cst_32 = arith.constant 3.200000e+01 : f32
    %67 = vector.broadcast %cst_32 : f32 to vector<16x1xf32>
    %68 = arith.divf %66, %67 : vector<16x1xf32>
    %69 = arith.mulf %63, %63 : vector<16x1xf32>
    %70 = arith.subf %68, %69 : vector<16x1xf32>
    %cst_33 = arith.constant 0.000000e+00 : f32
    %71 = vector.broadcast %cst_33 : f32 to vector<16x1xf32>
    %72 = arith.maximumf %70, %71 : vector<16x1xf32>
    %73 = vector.broadcast %63 : vector<16x1xf32> to vector<16x32xf32>
    %74 = arith.subf %59, %73 : vector<16x32xf32>
    %cst_34 = arith.constant 9.99999974E-6 : f32
    %75 = vector.broadcast %cst_34 : f32 to vector<16x1xf32>
    %76 = arith.addf %72, %75 : vector<16x1xf32>
    %77 = math.rsqrt %76 : vector<16x1xf32>
    %78 = vector.broadcast %77 : vector<16x1xf32> to vector<16x32xf32>
    %79 = arith.mulf %74, %78 : vector<16x32xf32>
    %80 = vector.broadcast %10 : vector<1x32xf32> to vector<16x32xf32>
    %81 = arith.mulf %79, %80 : vector<16x32xf32>
    %82 = vector.broadcast %11 : vector<1x32xf32> to vector<16x32xf32>
    %83 = arith.addf %81, %82 : vector<16x32xf32>
    %cst_35 = arith.constant dense<0.000000e+00> : vector<16x128xf32>
    %84 = tpu.matmul %83, %5, %cst_35 {dimension_numbers = #tpu.dot_dimension_numbers<[1], [0], [0], [1], [0, 0, 1, 1], [], []>} : vector<16x32xf32>, vector<32x128xf32>, vector<16x128xf32> -> vector<16x128xf32>
    %85 = vector.broadcast %15 : vector<1x128xf32> to vector<16x128xf32>
    %86 = arith.addf %84, %85 : vector<16x128xf32>
    %cst_36 = arith.constant 0.000000e+00 : f32
    %87 = vector.broadcast %cst_36 : f32 to vector<16x128xf32>
    %88 = arith.maximumf %86, %87 : vector<16x128xf32>
    %cst_37 = arith.constant dense<0.000000e+00> : vector<16x32xf32>
    %89 = tpu.matmul %88, %4, %cst_37 {dimension_numbers = #tpu.dot_dimension_numbers<[1], [0], [0], [1], [0, 0, 1, 1], [], []>} : vector<16x128xf32>, vector<128x32xf32>, vector<16x32xf32> -> vector<16x32xf32>
    %90 = vector.broadcast %12 : vector<1x32xf32> to vector<16x32xf32>
    %91 = arith.addf %89, %90 : vector<16x32xf32>
    %92 = arith.addf %91, %83 : vector<16x32xf32>
    %cst_38 = arith.constant dense<0.000000e+00> : vector<16xf32>
    %93 = vector.multi_reduction <add>, %92, %cst_38 [1] : vector<16x32xf32> to vector<16xf32>
    %94 = vector.shape_cast %93 : vector<16xf32> to vector<16x1xf32>
    %cst_39 = arith.constant 3.200000e+01 : f32
    %95 = vector.broadcast %cst_39 : f32 to vector<16x1xf32>
    %96 = arith.divf %94, %95 : vector<16x1xf32>
    %97 = arith.mulf %92, %92 : vector<16x32xf32>
    %cst_40 = arith.constant dense<0.000000e+00> : vector<16xf32>
    %98 = vector.multi_reduction <add>, %97, %cst_40 [1] : vector<16x32xf32> to vector<16xf32>
    %99 = vector.shape_cast %98 : vector<16xf32> to vector<16x1xf32>
    %cst_41 = arith.constant 3.200000e+01 : f32
    %100 = vector.broadcast %cst_41 : f32 to vector<16x1xf32>
    %101 = arith.divf %99, %100 : vector<16x1xf32>
    %102 = arith.mulf %96, %96 : vector<16x1xf32>
    %103 = arith.subf %101, %102 : vector<16x1xf32>
    %cst_42 = arith.constant 0.000000e+00 : f32
    %104 = vector.broadcast %cst_42 : f32 to vector<16x1xf32>
    %105 = arith.maximumf %103, %104 : vector<16x1xf32>
    %106 = vector.broadcast %96 : vector<16x1xf32> to vector<16x32xf32>
    %107 = arith.subf %92, %106 : vector<16x32xf32>
    %cst_43 = arith.constant 9.99999974E-6 : f32
    %108 = vector.broadcast %cst_43 : f32 to vector<16x1xf32>
    %109 = arith.addf %105, %108 : vector<16x1xf32>
    %110 = math.rsqrt %109 : vector<16x1xf32>
    %111 = vector.broadcast %110 : vector<16x1xf32> to vector<16x32xf32>
    %112 = arith.mulf %107, %111 : vector<16x32xf32>
    %113 = vector.broadcast %13 : vector<1x32xf32> to vector<16x32xf32>
    %114 = arith.mulf %112, %113 : vector<16x32xf32>
    %115 = vector.broadcast %14 : vector<1x32xf32> to vector<16x32xf32>
    %116 = arith.addf %114, %115 : vector<16x32xf32>
    %c0_44 = arith.constant 0 : index
    %c0_45 = arith.constant 0 : index
    %117 = vector.load %arg4[%c0_44, %c0_45] : memref<16x32xf32, #tpu.memory_space<vmem>>, vector<16x32xf32>
    tpu.vector_store %arg4[%c0_44, %c0_45], %116 {strides = array<i32>} : memref<16x32xf32, #tpu.memory_space<vmem>>, vector<16x32xf32>,
    return
  }
}

</mosaic_0001>

<bundles_post_ra>
// kernel: decoder_block_forward.1
= control target key start
LH: loop header
LB: loop body
LE: loop exit
PB: predicated region body
PF: predicated region fallthrough
CT: control target
= control target key end

     0   :  { %vm60_vm0 = vcmask 261120   ;;  %s694_s0 = inlined_call_operand.vmem [shape: f32[16,32], index: 0, kind: input, shape index: {}]   ;;  %s695_s1 = inlined_call_operand.vmem [shape: f32[16,32], index: 1, kind: input, shape index: {}]   ;;  %s696_s2 = inlined_call_operand.vmem [shape: f32[192,32], index: 2, kind: input, shape index: {}]   ;;  %s697_s3 = inlined_call_operand.vmem [shape: f32[42,128], index: 3, kind: input, shape index: {}]   ;;  %s698_s4 = inlined_call_operand.hbm [shape: f32[16,32], index: 4, kind: output, shape index: {}]  }
   0x1   :  { %v25_v0 = vld [vmem:[%s696_s2 + $0x18] sm:$0xff]  ;;  %v24_v1 = vld [vmem:[%s696_s2 + $0x10] sm:$0xff]  ;;  %v18_v2 = vld [vmem:[%s694_s0] sm:$0xff] }
   0x2   :  { %94 = vmatpush.msra.mxu0 %v25_v0  ;;  %v19_v3 = vld [vmem:[%s694_s0 + $0x8] sm:$0xff]  ;;  %v22_v5 = vld [vmem:[%s696_s2] sm:$0xff]  ;;  %v61_v6 = vsel %vm60_vm0, %v18_v2, 0.0 }
   0x3   :  { %v23_v4 = vld [vmem:[%s696_s2 + $0x8] sm:$0xff]  ;;  %v68_v7 = vsel %vm60_vm0, %v19_v3, 0.0  ;;  %v62_v8 = vrot.slane %v61_v6, 4 }
   0x4   :  { %95 = vmatpush.msra.mxu0 %v24_v1  ;;  %v69_v9 = vrot.slane %v68_v7, 4 }
   0x5   :  { %v63_v10 = vadd.f32 %v62_v8, %v61_v6 }
   0x6   :  { %96 = vmatpush.msra.mxu0 %v23_v4  ;;  %v70_v11 = vadd.f32 %v69_v9, %v68_v7 }
   0x7   :  { %9 = vsyncpa [#allocation3], 0  ;;  %v64_v12 = vrot.slane %v63_v10, 2  ;;  %vm78_vm1 = vcmask 1041409   ;;  %v29_v21 = vld [vmem:[%s696_s2 + $0x38] sm:$0xff]  ;;  %v28_v22 = vld [vmem:[%s696_s2 + $0x30] sm:$0xff] }
   0x8   :  { %97 = vmatpush.msra.mxu0 %v22_v5  ;;  %v71_v13 = vrot.slane %v70_v11, 2  ;;  %205 = vmatpush.msra.mxu1 %v29_v21  ;;  %v20_v23 = vld [vmem:[%s695_s1] sm:$0xff]  ;;  %v21_v24 = vld [vmem:[%s695_s1 + $0x8] sm:$0xff]  ;;  %v469_v56 = vmov 32.0   ;;  %s470_s14 = smov [#allocation2]   ;;  %s399_s18 = sshll.u32 %s698_s4, 4  ;;  %s400_s18 = int_to_ptr.hbm [resolvable:$true] %s399_s18 }
   0x9   :  { %v65_v14 = vadd.f32 %v64_v12, %v63_v10  ;;  %v27_v25 = vld [vmem:[%s696_s2 + $0x28] sm:$0xff]  ;;  %v173_v26 = vsel %vm60_vm0, %v20_v23, 0.0  ;;  %v180_v27 = vsel %vm60_vm0, %v21_v24, 0.0  ;;  %v26_v30 = vld [vmem:[%s696_s2 + $0x20] sm:$0xff]  ;;  %429 = vrcp.f32 %v469_v56  ;;  %s397_s15 = sshll.u32 %s470_s14, 4  ;;  %s472_s19 = smov 8   ;;  %s398_s15 = int_to_ptr.vmem [resolvable:$true] %s397_s15 }
   0xa   :  { %v72_v15 = vadd.f32 %v71_v13, %v70_v11  ;;  %206 = vmatpush.msra.mxu1 %v28_v22  ;;  %v174_v28 = vrot.slane %v173_v26, 4  ;;  %v181_v29 = vrot.slane %v180_v27, 4  ;;  %v419_v37 = vld [vmem:[%s697_s3 + $0x20] ss:$0 sm:$0xff] }
   0xb   :  { %v66_v16 = vrot.slane %v65_v14, 1 }
   0xc   :  { %v73_v17 = vrot.slane %v72_v15, 1  ;;  %207 = vmatpush.msra.mxu1 %v27_v25  ;;  %v175_v31 = vadd.f32 %v174_v28, %v173_v26  ;;  %v182_v32 = vadd.f32 %v181_v29, %v180_v27 }
   0xd   :  { %v67_v18 = vadd.f32 %v66_v16, %v65_v14 }
   0xe   :  { %v74_v19 = vadd.f32 %v73_v17, %v72_v15  ;;  %208 = vmatpush.msra.mxu1 %v26_v30  ;;  %v176_v33 = vrot.slane %v175_v31, 2  ;;  %v183_v34 = vrot.slane %v182_v32, 2  ;;  %v421_v30 = vld [vmem:[%s697_s3 + $0x21] ss:$0 sm:$0xff] }
   0xf   :  { %v430_v57 = vpop.eup %429 }
  0x10   :  { %v79_v20 = vsel %vm78_vm1, %v74_v19, %v67_v18  ;;  %v177_v35 = vadd.f32 %v176_v33, %v175_v31  ;;  %v184_v36 = vadd.f32 %v183_v34, %v182_v32  ;;  %v117_v58 = vmul.f32 32.0, %v430_v57 }
  0x11   :  { %411 = vmatmul.msk.f32.vlgmr.msra.gmra.mxu0 %vm60_vm0, %v79_v20  ;;  %vm121_vm2 = vweird.f32 %v430_v57  ;;  %v420_v20 = vld [vmem:[%s697_s3 + $0x23] ss:$0 sm:$0xff] }
  0x12   :  { %v178_v38 = vrot.slane %v177_v35, 1  ;;  %v185_v39 = vrot.slane %v184_v36, 1  ;;  %v118_v59 = vsub.f32 1.0, %v117_v58 }
  0x14   :  { %v179_v40 = vadd.f32 %v178_v38, %v177_v35  ;;  %v186_v41 = vadd.f32 %v185_v39, %v184_v36  ;;  %v119_v60 = vmul.f32 %v430_v57, %v118_v59  ;;  %v422_v36 = vld [vmem:[%s697_s3 + $0x22] ss:$0 sm:$0xff] }
  0x16   :  { %v190_v44 = vsel %vm78_vm1, %v186_v41, %v179_v40  ;;  %v120_v61 = vadd.f32 %v430_v57, %v119_v60  ;;  %v46_v60 = vld [vmem:[%s697_s3] sm:$0xff] }
  0x17   :  { %412 = vmatmul.msk.f32.vlgmr.msra.gmra.mxu1 %vm60_vm0, %v190_v44 }
  0x18   :  { %v559_v63 = vsel %vm121_vm2, %v430_v57, %v120_v61  ;;  %v47_v57 = vld [vmem:[%s697_s3 + $0x8] sm:$0xff] }
  0x8e   :  { %v99_v42 = vpop.f32.mrf.mxu0 }
  0x8f   :  { %v100_v43 = vadd.f32 %v419_v37, %v99_v42 }
  0x91   :  { %v103_v45 = vrot.slane %v100_v43, 1  ;;  %v104_v46 = vperm.slane %v100_v43, 0 }
  0x93   :  { %v105_v47 = vperm.slane %v103_v45, 0  ;;  %v545_v48 = vadd.f32 %v104_v46, %v18_v2 }
  0x94   :  { %v210_v23 = vpop.f32.mrf.mxu1 }
  0x95   :  { %v110_v49 = vsel %vm60_vm0, %v545_v48, 0.0  ;;  %v549_v50 = vadd.f32 %v105_v47, %v19_v3  ;;  %v125_v52 = vmul.f32 %v545_v48, %v545_v48  ;;  %v211_v26 = vadd.f32 %v420_v20, %v210_v23  ;;  %v39_v23 = vld [vmem:[%s696_s2 + $0x88] sm:$0xff] }
  0x96   :  { %111 = vadd.xlane.f32.xlu0 %v110_v49 }
  0x97   :  { %v113_v51 = vsel %vm60_vm0, %v549_v50, 0.0  ;;  %v126_v53 = vmul.f32 %v549_v50, %v549_v50  ;;  %v127_v54 = vsel %vm60_vm0, %v125_v52, 0.0  ;;  %v214_v34 = vrot.slane %v211_v26, 1 }
  0x98   :  { %114 = vadd.xlane.f32.xlu1 %v113_v51  ;;  %v215_v38 = vperm.slane %v211_v26, 0  ;;  %v38_v26 = vld [vmem:[%s696_s2 + $0x80] sm:$0xff] }
  0x99   :  { %v130_v55 = vsel %vm60_vm0, %v126_v53, 0.0  ;;  %v216_v41 = vperm.slane %v214_v34, 0 }
  0x9e   :  { %128 = vadd.xlane.f32.xlu0 %v127_v54  ;;  %v49_v54 = vld [vmem:[%s697_s3 + $0x18] sm:$0xff] }
  0x9f   :  { %296 = vmatpush.msra.mxu2 %v49_v54 }
  0xa0   :  { %131 = vadd.xlane.f32.xlu1 %v130_v55  ;;  %v48_v55 = vld [vmem:[%s697_s3 + $0x10] sm:$0xff] }
  0xa1   :  { %297 = vmatpush.msra.mxu2 %v48_v55 }
  0xa3   :  { %298 = vmatpush.msra.mxu2 %v47_v57  ;;  %v426_v57 = vld [vmem:[%s697_s3 + $0x26] ss:$0 sm:$0xff] }
  0xa5   :  { %299 = vmatpush.msra.mxu2 %v46_v60 }
 0x109   :  { %v112_v62 = vpop.xlane.xlu0 %111 }
 0x10a   :  { %v123_v1 = vmul.f32 %v559_v63, %v112_v62 }
 0x10b   :  { %v115_v0 = vpop.xlane.xlu1 %114 }
 0x10c   :  { %v124_v2 = vmul.f32 %v559_v63, %v115_v0  ;;  %v135_v4 = vmul.f32 %v123_v1, %v123_v1  ;;  %v141_v29 = vsub.f32 %v545_v48, %v123_v1 }
 0x10e   :  { %v136_v7 = vmul.f32 %v124_v2, %v124_v2  ;;  %v142_v33 = vsub.f32 %v549_v50, %v124_v2 }
 0x111   :  { %v129_v3 = vpop.xlane.xlu0 %128 }
 0x112   :  { %v133_v5 = vmul.f32 %v129_v3, %v559_v63 }
 0x113   :  { %v132_v6 = vpop.xlane.xlu1 %131 }
 0x114   :  { %v137_v8 = vsub.f32 %v133_v5, %v135_v4  ;;  %v134_v9 = vmul.f32 %v132_v6, %v559_v63 }
 0x116   :  { %v139_v10 = vmax.f32 %v137_v8, 0.0  ;;  %v138_v11 = vsub.f32 %v134_v9, %v136_v7 }
 0x118   :  { %v143_v12 = vadd.f32 1e-05, %v139_v10  ;;  %v140_v13 = vmax.f32 %v138_v11, 0.0  ;;  %v45_v10 = vld [vmem:[%s696_s2 + $0xb8] sm:$0xff]  ;;  %v44_v11 = vld [vmem:[%s696_s2 + $0xb0] sm:$0xff] }
 0x119   :  { %310 = vmatpush.msra.mxu3 %v45_v10 }
 0x11a   :  { %431 = vrsqrt.f32 %v143_v12  ;;  %v144_v14 = vadd.f32 1e-05, %v140_v13  ;;  %vm151_vm4 = vweird.f32 %v143_v12  ;;  %v43_v13 = vld [vmem:[%s696_s2 + $0xa8] sm:$0xff] }
 0x11b   :  { %311 = vmatpush.msra.mxu3 %v44_v11 }
 0x11c   :  { %433 = vrsqrt.f32 %v144_v14  ;;  %vm161_vm7 = vweird.f32 %v144_v14 }
 0x11d   :  { %312 = vmatpush.msra.mxu3 %v43_v13 }
 0x120   :  { %v432_v15 = vpop.eup %431 }
 0x121   :  { %v146_v16 = vmul.f32 %v432_v15, %v143_v12  ;;  %vm152_vm3 = vweird.f32 %v432_v15 }
 0x122   :  { %v434_v17 = vpop.eup %433  ;;  %vm153_vm6 = vmor %vm151_vm4, %vm152_vm3 }
 0x123   :  { %v147_v18 = vmul.f32 %v432_v15, %v146_v16  ;;  %v156_v19 = vmul.f32 %v434_v17, %v144_v14  ;;  %vm162_vm5 = vweird.f32 %v434_v17 }
 0x124   :  { %vm163_vm8 = vmor %vm161_vm7, %vm162_vm5 }
 0x125   :  { %v148_v21 = vmul.f32 0.5, %v147_v18  ;;  %v157_v22 = vmul.f32 %v434_v17, %v156_v19  ;;  %v41_v18 = vld [vmem:[%s696_s2 + $0x98] sm:$0xff] }
 0x127   :  { %v149_v24 = vsub.f32 1.5, %v148_v21  ;;  %v158_v25 = vmul.f32 0.5, %v157_v22  ;;  %v40_v21 = vld [vmem:[%s696_s2 + $0x90] sm:$0xff] }
 0x129   :  { %v150_v27 = vmul.f32 %v432_v15, %v149_v24  ;;  %v159_v28 = vsub.f32 1.5, %v158_v25 }
 0x12b   :  { %v160_v31 = vmul.f32 %v434_v17, %v159_v28  ;;  %v154_v32 = vsel %vm153_vm6, %v432_v15, %v150_v27  ;;  %v42_v15 = vld [vmem:[%s696_s2 + $0xa0] sm:$0xff]  ;;  %v37_v28 = vld [vmem:[%s696_s2 + $0x78] sm:$0xff] }
 0x12c   :  { %v165_v35 = vmul.f32 %v154_v32, %v141_v29  ;;  %313 = vmatpush.msra.mxu3 %v42_v15  ;;  %v36_v32 = vld [vmem:[%s696_s2 + $0x70] sm:$0xff] }
 0x12d   :  { %v164_v37 = vsel %vm163_vm8, %v434_v17, %v160_v31 }
 0x12e   :  { %v168_v39 = vmul.f32 %v421_v30, %v165_v35  ;;  %v166_v40 = vmul.f32 %v164_v37, %v142_v33  ;;  %314 = vmatpush.msra.mxu3 %v41_v18  ;;  %v423_v35 = vld [vmem:[%s697_s3 + $0x24] ss:$0 sm:$0xff] }
 0x130   :  { %v171_v42 = vadd.f32 %v422_v36, %v168_v39  ;;  %v169_v43 = vmul.f32 %v421_v30, %v166_v40  ;;  %315 = vmatpush.msra.mxu3 %v40_v21  ;;  %v424_v40 = vld [vmem:[%s697_s3 + $0x25] ss:$0 sm:$0xff] }
 0x132   :  { %v576_v44 = vadd.f32 %v215_v38, %v171_v42  ;;  %v172_v45 = vadd.f32 %v422_v36, %v169_v43  ;;  %316 = vmatpush.msra.mxu3 %v39_v23  ;;  %v35_v36 = vld [vmem:[%s696_s2 + $0x68] sm:$0xff] }
 0x134   :  { %v221_v46 = vsel %vm60_vm0, %v576_v44, 0.0  ;;  %v580_v47 = vadd.f32 %v216_v41, %v172_v45  ;;  %v229_v51 = vmul.f32 %v576_v44, %v576_v44  ;;  %317 = vmatpush.msra.mxu3 %v38_v26  ;;  %v34_v41 = vld [vmem:[%s696_s2 + $0x60] sm:$0xff] }
 0x135   :  { %222 = vadd.xlane.f32.xlu2 %v221_v46 }
 0x136   :  { %v224_v48 = vsel %vm60_vm0, %v580_v47, 0.0  ;;  %v230_v49 = vmul.f32 %v580_v47, %v580_v47  ;;  %v231_v52 = vsel %vm60_vm0, %v229_v51, 0.0  ;;  %318 = vmatpush.msra.mxu3 %v37_v28 }
 0x137   :  { %225 = vadd.xlane.f32.xlu0 %v224_v48  ;;  %v31_v48 = vld [vmem:[%s696_s2 + $0x48] sm:$0xff] }
 0x138   :  { %v234_v50 = vsel %vm60_vm0, %v230_v49, 0.0  ;;  %319 = vmatpush.msra.mxu3 %v36_v32  ;;  %v30_v49 = vld [vmem:[%s696_s2 + $0x40] sm:$0xff] }
 0x139   :  { %235 = vadd.xlane.f32.xlu1 %v234_v50  ;;  %v425_v50 = vld [vmem:[%s697_s3 + $0x29] ss:$0 sm:$0xff] }
 0x13a   :  { %320 = vmatpush.msra.mxu3 %v35_v36 }
 0x13c   :  { %321 = vmatpush.msra.mxu3 %v34_v41 }
 0x13d   :  { %232 = vadd.xlane.f32.xlu2 %v231_v52 }
 0x1a8   :  { %v223_v53 = vpop.xlane.xlu2 %222 }
 0x1a9   :  { %v227_v61 = vmul.f32 %v223_v53, %v559_v63 }
 0x1aa   :  { %v226_v56 = vpop.xlane.xlu0 %225 }
 0x1ab   :  { %v600_v58 = vmul.f32 %v226_v56, %v559_v63  ;;  %v239_v3 = vmul.f32 %v227_v61, %v227_v61  ;;  %v245_v31 = vsub.f32 %v576_v44, %v227_v61  ;;  %v33_v44 = vld [vmem:[%s696_s2 + $0x58] sm:$0xff] }
 0x1ac   :  { %v236_v59 = vpop.xlane.xlu1 %235  ;;  %322 = vmatpush.msra.mxu3 %v33_v44 }
 0x1ad   :  { %v240_v62 = vmul.f32 %v600_v58, %v600_v58  ;;  %v238_v0 = vmul.f32 %v236_v59, %v559_v63  ;;  %v246_v38 = vsub.f32 %v580_v47, %v600_v58  ;;  %v32_v47 = vld [vmem:[%s696_s2 + $0x50] sm:$0xff] }
 0x1ae   :  { %323 = vmatpush.msra.mxu3 %v32_v47 }
 0x1af   :  { %v242_v1 = vsub.f32 %v238_v0, %v240_v62 }
 0x1b0   :  { %v233_v2 = vpop.xlane.xlu2 %232  ;;  %324 = vmatpush.msra.mxu3 %v31_v48 }
 0x1b1   :  { %v244_v4 = vmax.f32 %v242_v1, 0.0  ;;  %v237_v5 = vmul.f32 %v233_v2, %v559_v63 }
 0x1b2   :  { %325 = vmatpush.msra.mxu3 %v30_v49 }
 0x1b3   :  { %v248_v6 = vadd.f32 1e-05, %v244_v4  ;;  %v241_v7 = vsub.f32 %v237_v5, %v239_v3 }
 0x1b5   :  { %435 = vrsqrt.f32 %v248_v6  ;;  %v243_v8 = vmax.f32 %v241_v7, 0.0  ;;  %vm265_vm13 = vweird.f32 %v248_v6 }
 0x1b7   :  { %v247_v9 = vadd.f32 1e-05, %v243_v8 }
 0x1b9   :  { %437 = vrsqrt.f32 %v247_v9  ;;  %vm255_vm11 = vweird.f32 %v247_v9 }
 0x1bb   :  { %v436_v12 = vpop.eup %435 }
 0x1bc   :  { %v260_v14 = vmul.f32 %v436_v12, %v248_v6  ;;  %vm266_vm10 = vweird.f32 %v436_v12 }
 0x1bd   :  { %vm267_vm14 = vmor %vm265_vm13, %vm266_vm10 }
 0x1be   :  { %v261_v16 = vmul.f32 %v436_v12, %v260_v14 }
 0x1bf   :  { %v438_v17 = vpop.eup %437 }
 0x1c0   :  { %v262_v19 = vmul.f32 0.5, %v261_v16  ;;  %v250_v20 = vmul.f32 %v438_v17, %v247_v9  ;;  %vm256_vm9 = vweird.f32 %v438_v17 }
 0x1c1   :  { %vm257_vm12 = vmor %vm255_vm11, %vm256_vm9 }
 0x1c2   :  { %v251_v22 = vmul.f32 %v438_v17, %v250_v20  ;;  %v263_v24 = vsub.f32 1.5, %v262_v19 }
 0x1c4   :  { %v252_v25 = vmul.f32 0.5, %v251_v22  ;;  %v264_v29 = vmul.f32 %v436_v12, %v263_v24 }
 0x1c6   :  { %v253_v27 = vsub.f32 1.5, %v252_v25  ;;  %v268_v37 = vsel %vm267_vm14, %v436_v12, %v264_v29 }
 0x1c7   :  { %v270_v43 = vmul.f32 %v268_v37, %v246_v38 }
 0x1c8   :  { %v254_v30 = vmul.f32 %v438_v17, %v253_v27 }
 0x1c9   :  { %v273_v45 = vmul.f32 %v423_v35, %v270_v43 }
 0x1ca   :  { %v258_v33 = vsel %vm257_vm12, %v438_v17, %v254_v30 }
 0x1cb   :  { %v269_v34 = vmul.f32 %v258_v33, %v245_v31  ;;  %v276_v46 = vadd.f32 %v424_v40, %v273_v45  ;;  %v427_v31 = vld [vmem:[%s697_s3 + $0x27] ss:$0 sm:$0xff] }
 0x1cd   :  { %v272_v39 = vmul.f32 %v423_v35, %v269_v34  ;;  %v428_v35 = vld [vmem:[%s697_s3 + $0x28] ss:$0 sm:$0xff]  ;;  %s471_s3 = smov 128  }
 0x1cf   :  { %v275_v42 = vadd.f32 %v424_v40, %v272_v39 }
 0x1d1   :  { %413 = vmatmul.msk.f32.vlgmr.msra.gmra.mxu2 %vm60_vm0, %v275_v42 }
 0x1d9   :  { %414 = vmatmul.msk.f32.gmra.mxu2 %vm60_vm0, %v276_v46 }
 0x254   :  { %v301_v51 = vpop.f32.mrf.mxu2 }
 0x255   :  { %v302_v52 = vadd.f32 %v425_v50, %v301_v51 }
 0x257   :  { %v307_v53 = vmax.f32 %v302_v52, 0.0 }
 0x259   :  { %326 = vmatmul.f32.vlgmr.msra.gmra.mxu3 %v307_v53 }
 0x25c   :  { %v304_v54 = vpop.f32.mrf.mxu2 }
 0x25d   :  { %v305_v55 = vadd.f32 %v425_v50, %v304_v54 }
 0x25f   :  { %v308_v56 = vmax.f32 %v305_v55, 0.0 }
 0x261   :  { %329 = vmatmul.f32.gmra.mxu3 %v308_v56 }
 0x2dc   :  { %v327_v58 = vpop.f32.mrf.mxu3 }
 0x2dd   :  { %v328_v59 = vadd.f32 %v426_v57, %v327_v58 }
 0x2df   :  { %v333_v60 = vadd.f32 %v328_v59, %v275_v42 }
 0x2e1   :  { %v335_v61 = vsel %vm60_vm0, %v333_v60, 0.0  ;;  %v343_v62 = vmul.f32 %v333_v60, %v333_v60 }
 0x2e2   :  { %336 = vadd.xlane.f32.xlu2 %v335_v61 }
 0x2e3   :  { %v345_v0 = vsel %vm60_vm0, %v343_v62, 0.0 }
 0x2e4   :  { %346 = vadd.xlane.f32.xlu1 %v345_v0  ;;  %v330_v1 = vpop.f32.mrf.mxu3 }
 0x2e5   :  { %v331_v2 = vadd.f32 %v426_v57, %v330_v1 }
 0x2e7   :  { %v334_v3 = vadd.f32 %v331_v2, %v276_v46 }
 0x2e9   :  { %v338_v4 = vsel %vm60_vm0, %v334_v3, 0.0  ;;  %v344_v5 = vmul.f32 %v334_v3, %v334_v3 }
 0x2ea   :  { %339 = vadd.xlane.f32.xlu0 %v338_v4 }
 0x2eb   :  { %v348_v6 = vsel %vm60_vm0, %v344_v5, 0.0 }
 0x2ec   :  { %349 = vadd.xlane.f32.xlu2 %v348_v6 }
 0x355   :  { %v337_v7 = vpop.xlane.xlu2 %336 }
 0x356   :  { %v341_v8 = vmul.f32 %v337_v7, %v559_v63 }
 0x357   :  { %v347_v9 = vpop.xlane.xlu1 %346 }
 0x358   :  { %v353_v10 = vmul.f32 %v341_v8, %v341_v8  ;;  %v351_v11 = vmul.f32 %v347_v9, %v559_v63  ;;  %v359_v30 = vsub.f32 %v333_v60, %v341_v8 }
 0x35a   :  { %v355_v12 = vsub.f32 %v351_v11, %v353_v10 }
 0x35c   :  { %v357_v13 = vmax.f32 %v355_v12, 0.0 }
 0x35d   :  { %v340_v14 = vpop.xlane.xlu0 %339 }
 0x35e   :  { %v361_v15 = vadd.f32 1e-05, %v357_v13  ;;  %v342_v16 = vmul.f32 %v340_v14, %v559_v63 }
 0x35f   :  { %v350_v17 = vpop.xlane.xlu2 %349 }
 0x360   :  { %439 = vrsqrt.f32 %v361_v15  ;;  %v354_v18 = vmul.f32 %v342_v16, %v342_v16  ;;  %v352_v19 = vmul.f32 %v350_v17, %v559_v63  ;;  %vm369_vm1 = vweird.f32 %v361_v15 }
 0x361   :  { %v360_v41 = vsub.f32 %v334_v3, %v342_v16 }
 0x362   :  { %v356_v20 = vsub.f32 %v352_v19, %v354_v18 }
 0x364   :  { %v358_v21 = vmax.f32 %v356_v20, 0.0 }
 0x366   :  { %v440_v22 = vpop.eup %439  ;;  %v362_v24 = vadd.f32 1e-05, %v358_v21 }
 0x367   :  { %v364_v23 = vmul.f32 %v440_v22, %v361_v15  ;;  %vm370_vm15 = vweird.f32 %v440_v22 }
 0x368   :  { %441 = vrsqrt.f32 %v362_v24  ;;  %vm371_vm2 = vmor %vm369_vm1, %vm370_vm15  ;;  %vm379_vm4 = vweird.f32 %v362_v24 }
 0x369   :  { %v365_v25 = vmul.f32 %v440_v22, %v364_v23 }
 0x36b   :  { %v366_v26 = vmul.f32 0.5, %v365_v25 }
 0x36d   :  { %v367_v27 = vsub.f32 1.5, %v366_v26 }
 0x36e   :  { %v442_v28 = vpop.eup %441 }
 0x36f   :  { %v368_v29 = vmul.f32 %v440_v22, %v367_v27  ;;  %v374_v63 = vmul.f32 %v442_v28, %v362_v24  ;;  %vm380_vm3 = vweird.f32 %v442_v28 }
 0x370   :  { %vm381_vm5 = vmor %vm379_vm4, %vm380_vm3 }
 0x371   :  { %v372_v32 = vsel %vm371_vm2, %v440_v22, %v368_v29  ;;  %v375_v34 = vmul.f32 %v442_v28, %v374_v63 }
 0x372   :  { %v383_v33 = vmul.f32 %v372_v32, %v359_v30 }
 0x373   :  { %v376_v37 = vmul.f32 0.5, %v375_v34 }
 0x374   :  { %v386_v36 = vmul.f32 %v427_v31, %v383_v33 }
 0x375   :  { %v377_v38 = vsub.f32 1.5, %v376_v37 }
 0x376   :  { %v389_v39 = vadd.f32 %v428_v35, %v386_v36 }
 0x377   :  { %v378_v40 = vmul.f32 %v442_v28, %v377_v38 }
 0x378   :  { %391 = vst.msk [vmem:[#allocation2] sm:$0xff] %vm60_vm0, %v389_v39 }
 0x379   :  { %v382_v42 = vsel %vm381_vm5, %v442_v28, %v378_v40 }
 0x37a   :  { %v384_v43 = vmul.f32 %v382_v42, %v360_v41 }
 0x37c   :  { %v387_v44 = vmul.f32 %v427_v31, %v384_v43 }
 0x37e   :  { %v390_v45 = vadd.f32 %v428_v35, %v387_v44 }
 0x380   :  { %392 = vst.msk [vmem:[#allocation2 + $0x8] sm:$0xff] %vm60_vm0, %v390_v45 }
 0x381   :  { %405 = dma.vmem_to_hbm [thread:$0]  %s398_s15, 256, %s400_s18, [#allocation3], %s471_s3, %s471_s3, %s472_s19  }
 0x382   :  { %467 = dma.done.wait [#allocation3], 256  }
 0x383   :  { %468 = vsyncadd [#allocation3], 4294967040 }
 0x384   :  { %410 = vsyncpa [#allocation3], 1 }

</bundles_post_ra>
